<compile_context>
chip_gen: v5e
topology: v5e:2x2
jax: 0.10.0
libtpu: 0.0.40
codegen_flags: <defaults>
</compile_context>

<pallas_src>
import jax
import jax.numpy as jnp
from jax.experimental import pallas as pl
from jax.experimental.pallas import tpu as pltpu


def _critic_kernel(state_ref, action_ref, w1s_ref, w1a_ref, b1_ref,
                   w2_ref, b2_ref, wq_ref, bq_ref, q_ref):
    # state_ref:  [TB, Ds] f32    action_ref: [TB, Da] f32
    # w1s_ref:    [Ds, F1] bf16   w1a_ref:    [Da, F1] bf16   b1_ref: [1, F1] f32
    # w2_ref:     [F1, F2] bf16   b2_ref:     [1, F2]  f32
    # wq_ref:     [1,  F2] f32    bq_ref:     [1, 1]   f32
    # q_ref:      [TB, 1]  f32

    # fc1 (fused concat): h1 = state @ W1s + action @ W1a + b1, ReLU.
    # bf16 operands feed the MXU at its native rate; accumulate in f32.
    s_bf = state_ref[...].astype(jnp.bfloat16)
    a_bf = action_ref[...].astype(jnp.bfloat16)
    h1 = jnp.dot(s_bf, w1s_ref[...], preferred_element_type=jnp.float32)
    h1 = h1 + jnp.dot(a_bf, w1a_ref[...], preferred_element_type=jnp.float32)
    h1 = jnp.maximum(h1 + b1_ref[...], 0.0)          # bias + ReLU in f32 (VPU)

    # fc2: dominant MXU pass, bf16 operands, f32 accumulate.
    h2 = jnp.dot(h1.astype(jnp.bfloat16), w2_ref[...],
                 preferred_element_type=jnp.float32) + b2_ref[...]
    h2 = jnp.maximum(h2, 0.0)

    # q head: degenerate [F2,1] matmul -> VPU multiply + lane reduce (f32).
    q_ref[...] = jnp.sum(h2 * wq_ref[...], axis=-1, keepdims=True) + bq_ref[...]


def _round_up(x, m):
    return ((x + m - 1) // m) * m


def critic_forward(state, action, params, *, batch_tile=2048):
    """q = Wq @ relu(W2 @ relu(W1 @ [state; action] + b1) + b2) + bq."""
    w1s, w1a, b1, w2, b2, wq, bq = params
    B, Ds = state.shape
    Da = action.shape[1]
    F1 = w1s.shape[1]
    F2 = w2.shape[1]

    # Batch tile: multiple of 16 (bf16 sublane packing).  Cap at ceil(B/2)
    # (rounded up) so moderate/large batches give >=2 grid steps for the two
    # v7x TensorCores; cap at batch_tile so huge batches still pipeline with
    # weights resident in VMEM.
    half = _round_up(pl.cdiv(B, 2), 16)
    TB = max(16, min(_round_up(batch_tile, 16), half))
    Bp = _round_up(B, TB)
    if Bp != B:
        pad = Bp - B
        state = jnp.pad(state, ((0, pad), (0, 0)))
        action = jnp.pad(action, ((0, pad), (0, 0)))

    grid = (Bp // TB,)
    batch_map = lambda i: (i, 0)      # tiles over the batch axis
    resident_map = lambda i: (0, 0)   # weights: same block every iteration

    cost = pl.CostEstimate(
        flops=2 * B * ((Ds + Da) * F1 + F1 * F2 + F2),
        transcendentals=0,
        bytes_accessed=(4 * B * (Ds + Da)                    # f32 inputs
                        + 2 * ((Ds + Da) * F1 + F1 * F2)     # bf16 weights
                        + 4 * (F1 + 2 * F2 + 1)              # f32 biases + wq
                        + 4 * B),                            # f32 output
    )

    q = pl.pallas_call(
        _critic_kernel,
        out_shape=jax.ShapeDtypeStruct((Bp, 1), jnp.float32),
        grid=grid,
        in_specs=[
            pl.BlockSpec((TB, Ds), batch_map),
            pl.BlockSpec((TB, Da), batch_map),
            pl.BlockSpec((Ds, F1), resident_map),
            pl.BlockSpec((Da, F1), resident_map),
            pl.BlockSpec((1, F1), resident_map),
            pl.BlockSpec((F1, F2), resident_map),
            pl.BlockSpec((1, F2), resident_map),
            pl.BlockSpec((1, F2), resident_map),
            pl.BlockSpec((1, 1), resident_map),
        ],
        out_specs=pl.BlockSpec((TB, 1), batch_map),
        compiler_params=pltpu.CompilerParams(
            dimension_semantics=("parallel",),   # batch tiles are independent
        ),
        cost_estimate=cost,
    )(state, action, w1s, w1a, b1, w2, b2, wq, bq)

    return q[:B]


def init_critic_params(key, input_dim, n_actions, fc1_dims=256, fc2_dims=256):
    """PyTorch nn.Linear-style init (U[-1/sqrt(fan_in), +]).

    fc1 is stored split (state/action halves) and matmul weights are stored
    bf16 (MXU-native); biases and the q-head row stay f32.
    """
    d_in = input_dim + n_actions
    k1, k2, k3, k4, k5, k6 = jax.random.split(key, 6)

    def linear(kw, kb, fan_in, fan_out):
        bound = 1.0 / jnp.sqrt(fan_in)
        # stored as (in, out) == transpose of PyTorch's (out, in)
        w = jax.random.uniform(kw, (fan_in, fan_out), jnp.float32, -bound, bound)
        b = jax.random.uniform(kb, (1, fan_out), jnp.float32, -bound, bound)
        return w, b

    w1, b1 = linear(k1, k2, d_in, fc1_dims)
    w1s = w1[:input_dim].astype(jnp.bfloat16)        # fused-concat split
    w1a = w1[input_dim:].astype(jnp.bfloat16)
    w2, b2 = linear(k3, k4, fc1_dims, fc2_dims)
    w2 = w2.astype(jnp.bfloat16)
    wq_col, bq = linear(k5, k6, fc2_dims, 1)
    wq = wq_col.T                                     # q head as [1, F2] f32 row
    return (w1s, w1a, b1, w2, b2, wq, bq)


def critic_reference_f32(state, action, params):
    """Pure-JAX f32 reference of the PyTorch forward pass."""
    w1s, w1a, b1, w2, b2, wq, bq = params
    w1 = jnp.concatenate([w1s.astype(jnp.float32), w1a.astype(jnp.float32)], axis=0)
    x = jnp.concatenate([state, action], axis=1)
    h1 = jax.nn.relu(x @ w1 + b1)
    h2 = jax.nn.relu(h1 @ w2.astype(jnp.float32) + b2)
    return h2 @ wq.T + bq


def critic_reference_mixed(state, action, params):
    """Reference mirroring the kernel's bf16-operand / f32-accumulate math."""
    w1s, w1a, b1, w2, b2, wq, bq = params
    h1 = jnp.dot(state.astype(jnp.bfloat16), w1s, preferred_element_type=jnp.float32)
    h1 = h1 + jnp.dot(action.astype(jnp.bfloat16), w1a,
                      preferred_element_type=jnp.float32)
    h1 = jax.nn.relu(h1 + b1)
    h2 = jax.nn.relu(jnp.dot(h1.astype(jnp.bfloat16), w2,
                             preferred_element_type=jnp.float32) + b2)
    return jnp.sum(h2 * wq, axis=-1, keepdims=True) + bq


if __name__ == "__main__":
    # small shapes consistent with the module: batch=8, state dim=16, actions=4
    batch, input_dim, n_actions = 8, 16, 4
    fc1_dims, fc2_dims = 256, 256

    key = jax.random.PRNGKey(0)
    k_state, k_action, k_params = jax.random.split(key, 3)

    state = jax.random.normal(k_state, (batch, input_dim), jnp.float32)
    action = jax.random.normal(k_action, (batch, n_actions), jnp.float32)
    params = init_critic_params(k_params, input_dim, n_actions, fc1_dims, fc2_dims)

    q = critic_forward(state, action, params)
    q = jax.block_until_ready(q)
    assert q.shape == (batch, 1), q.shape

    # Structural check vs. a reference with identical (bf16-operand) precision.
    q_mixed = critic_reference_mixed(state, action, params)
    assert jnp.allclose(q, q_mixed, atol=2e-3, rtol=2e-3), (q, q_mixed)

    # Sanity check vs. the pure f32 forward (bf16 rounding -> looser tolerance).
    q_f32 = critic_reference_f32(state, action, params)
    assert jnp.allclose(q, q_f32, atol=5e-2, rtol=5e-2), (q, q_f32)

    # TODO(synk): optimizer / checkpointing / device placement from the PyTorch
    # module are training-infra glue with no Pallas equivalent.
    print("KERNEL_OK")
</pallas_src>

<mosaic_0001>
module attributes {stable_mosaic.version = 11 : i64} {
  func.func @_critic_kernel(%arg0: i32, %arg1: memref<16x16xf32, #tpu.memory_space<vmem>>, %arg2: memref<16x4xf32, #tpu.memory_space<vmem>>, %arg3: memref<16x256xbf16, #tpu.memory_space<vmem>>, %arg4: memref<4x256xbf16, #tpu.memory_space<vmem>>, %arg5: memref<1x256xf32, #tpu.memory_space<vmem>>, %arg6: memref<256x256xbf16, #tpu.memory_space<vmem>>, %arg7: memref<1x256xf32, #tpu.memory_space<vmem>>, %arg8: memref<1x256xf32, #tpu.memory_space<vmem>>, %arg9: memref<1x1xf32, #tpu.memory_space<vmem>>, %arg10: memref<16x1xf32, #tpu.memory_space<vmem>>) attributes {dimension_semantics = [#tpu.dimension_semantics<parallel>], iteration_bounds = array<i64: 1>, scalar_prefetch = 0 : i64, scratch_operands = 0 : i64, tpu.core_type = #tpu.core_type<tc>, window_params = [{transform_indices = @transform_0, window_bounds = array<i64: 16, 16>}, {transform_indices = @transform_1, window_bounds = array<i64: 16, 4>}, {pipeline_mode = #tpu.pipeline_mode<synchronous>, transform_indices = @transform_2, window_bounds = array<i64: 16, 256>}, {pipeline_mode = #tpu.pipeline_mode<synchronous>, transform_indices = @transform_3, window_bounds = array<i64: 4, 256>}, {pipeline_mode = #tpu.pipeline_mode<synchronous>, transform_indices = @transform_4, window_bounds = array<i64: 1, 256>}, {pipeline_mode = #tpu.pipeline_mode<synchronous>, transform_indices = @transform_5, window_bounds = array<i64: 256, 256>}, {pipeline_mode = #tpu.pipeline_mode<synchronous>, transform_indices = @transform_6, window_bounds = array<i64: 1, 256>}, {pipeline_mode = #tpu.pipeline_mode<synchronous>, transform_indices = @transform_7, window_bounds = array<i64: 1, 256>}, {pipeline_mode = #tpu.pipeline_mode<synchronous>, transform_indices = @transform_8, window_bounds = array<i64: 1, 1>}, {transform_indices = @transform_9, window_bounds = array<i64: 16, 1>}]} {
    %c0 = arith.constant 0 : index
    %c0_0 = arith.constant 0 : index
    %0 = vector.load %arg1[%c0, %c0_0] : memref<16x16xf32, #tpu.memory_space<vmem>>, vector<16x16xf32>
    %1 = arith.truncf %0 : vector<16x16xf32> to vector<16x16xbf16>
    %c0_1 = arith.constant 0 : index
    %c0_2 = arith.constant 0 : index
    %2 = vector.load %arg2[%c0_1, %c0_2] : memref<16x4xf32, #tpu.memory_space<vmem>>, vector<16x4xf32>
    %3 = arith.truncf %2 : vector<16x4xf32> to vector<16x4xbf16>
    %c0_3 = arith.constant 0 : index
    %c0_4 = arith.constant 0 : index
    %4 = vector.load %arg3[%c0_3, %c0_4] : memref<16x256xbf16, #tpu.memory_space<vmem>>, vector<16x256xbf16>
    %cst = arith.constant dense<0.000000e+00> : vector<16x256xf32>
    %5 = tpu.matmul %1, %4, %cst {dimension_numbers = #tpu.dot_dimension_numbers<[1], [0], [0], [1], [0, 0, 1, 1], [], []>} : vector<16x16xbf16>, vector<16x256xbf16>, vector<16x256xf32> -> vector<16x256xf32>
    %c0_5 = arith.constant 0 : index
    %c0_6 = arith.constant 0 : index
    %6 = vector.load %arg4[%c0_5, %c0_6] : memref<4x256xbf16, #tpu.memory_space<vmem>>, vector<4x256xbf16>
    %cst_7 = arith.constant dense<0.000000e+00> : vector<16x256xf32>
    %7 = tpu.matmul %3, %6, %cst_7 {dimension_numbers = #tpu.dot_dimension_numbers<[1], [0], [0], [1], [0, 0, 1, 1], [], []>} : vector<16x4xbf16>, vector<4x256xbf16>, vector<16x256xf32> -> vector<16x256xf32>
    %8 = arith.addf %5, %7 : vector<16x256xf32>
    %c0_8 = arith.constant 0 : index
    %c0_9 = arith.constant 0 : index
    %9 = vector.load %arg5[%c0_8, %c0_9] : memref<1x256xf32, #tpu.memory_space<vmem>>, vector<1x256xf32>
    %10 = vector.broadcast %9 : vector<1x256xf32> to vector<16x256xf32>
    %11 = arith.addf %8, %10 : vector<16x256xf32>
    %cst_10 = arith.constant 0.000000e+00 : f32
    %12 = vector.broadcast %cst_10 : f32 to vector<16x256xf32>
    %13 = arith.maximumf %11, %12 : vector<16x256xf32>
    %14 = arith.truncf %13 : vector<16x256xf32> to vector<16x256xbf16>
    %c0_11 = arith.constant 0 : index
    %c0_12 = arith.constant 0 : index
    %15 = vector.load %arg6[%c0_11, %c0_12] : memref<256x256xbf16, #tpu.memory_space<vmem>>, vector<256x256xbf16>
    %cst_13 = arith.constant dense<0.000000e+00> : vector<16x256xf32>
    %16 = tpu.matmul %14, %15, %cst_13 {dimension_numbers = #tpu.dot_dimension_numbers<[1], [0], [0], [1], [0, 0, 1, 1], [], []>} : vector<16x256xbf16>, vector<256x256xbf16>, vector<16x256xf32> -> vector<16x256xf32>
    %c0_14 = arith.constant 0 : index
    %c0_15 = arith.constant 0 : index
    %17 = vector.load %arg7[%c0_14, %c0_15] : memref<1x256xf32, #tpu.memory_space<vmem>>, vector<1x256xf32>
    %18 = vector.broadcast %17 : vector<1x256xf32> to vector<16x256xf32>
    %19 = arith.addf %16, %18 : vector<16x256xf32>
    %cst_16 = arith.constant 0.000000e+00 : f32
    %20 = vector.broadcast %cst_16 : f32 to vector<16x256xf32>
    %21 = arith.maximumf %19, %20 : vector<16x256xf32>
    %c0_17 = arith.constant 0 : index
    %c0_18 = arith.constant 0 : index
    %22 = vector.load %arg8[%c0_17, %c0_18] : memref<1x256xf32, #tpu.memory_space<vmem>>, vector<1x256xf32>
    %23 = vector.broadcast %22 : vector<1x256xf32> to vector<16x256xf32>
    %24 = arith.mulf %21, %23 : vector<16x256xf32>
    %cst_19 = arith.constant dense<0.000000e+00> : vector<16xf32>
    %25 = vector.multi_reduction <add>, %24, %cst_19 [1] : vector<16x256xf32> to vector<16xf32>
    %26 = vector.shape_cast %25 : vector<16xf32> to vector<16x1xf32>
    %c0_20 = arith.constant 0 : index
    %c0_21 = arith.constant 0 : index
    %27 = vector.load %arg9[%c0_20, %c0_21] : memref<1x1xf32, #tpu.memory_space<vmem>>, vector<1x1xf32>
    %28 = vector.broadcast %27 : vector<1x1xf32> to vector<16x1xf32>
    %29 = arith.addf %26, %28 : vector<16x1xf32>
    %c0_22 = arith.constant 0 : index
    %c0_23 = arith.constant 0 : index
    %30 = vector.load %arg10[%c0_22, %c0_23] : memref<16x1xf32, #tpu.memory_space<vmem>>, vector<16x1xf32>
    tpu.vector_store %arg10[%c0_22, %c0_23], %29 {strides = array<i32>} : memref<16x1xf32, #tpu.memory_space<vmem>>, vector<16x1xf32>,
    return
  }
  func.func @transform_0(%arg0: i32) -> (i32, i32) {
    %c0_i32 = arith.constant 0 : i32
    %c0_i32_0 = arith.constant 0 : i32
    return %arg0, %c0_i32 : i32, i32
  }
  func.func @transform_1(%arg0: i32) -> (i32, i32) {
    %c0_i32 = arith.constant 0 : i32
    %c0_i32_0 = arith.constant 0 : i32
    return %arg0, %c0_i32 : i32, i32
  }
  func.func @transform_2(%arg0: i32) -> (i32, i32) {
    %c0_i32 = arith.constant 0 : i32
    %c0_i32_0 = arith.constant 0 : i32
    %c0_i32_1 = arith.constant 0 : i32
    return %c0_i32, %c0_i32_0 : i32, i32
  }
  func.func @transform_3(%arg0: i32) -> (i32, i32) {
    %c0_i32 = arith.constant 0 : i32
    %c0_i32_0 = arith.constant 0 : i32
    %c0_i32_1 = arith.constant 0 : i32
    return %c0_i32, %c0_i32_0 : i32, i32
  }
  func.func @transform_4(%arg0: i32) -> (i32, i32) {
    %c0_i32 = arith.constant 0 : i32
    %c0_i32_0 = arith.constant 0 : i32
    %c0_i32_1 = arith.constant 0 : i32
    return %c0_i32, %c0_i32_0 : i32, i32
  }
  func.func @transform_5(%arg0: i32) -> (i32, i32) {
    %c0_i32 = arith.constant 0 : i32
    %c0_i32_0 = arith.constant 0 : i32
    %c0_i32_1 = arith.constant 0 : i32
    return %c0_i32, %c0_i32_0 : i32, i32
  }
  func.func @transform_6(%arg0: i32) -> (i32, i32) {
    %c0_i32 = arith.constant 0 : i32
    %c0_i32_0 = arith.constant 0 : i32
    %c0_i32_1 = arith.constant 0 : i32
    return %c0_i32, %c0_i32_0 : i32, i32
  }
  func.func @transform_7(%arg0: i32) -> (i32, i32) {
    %c0_i32 = arith.constant 0 : i32
    %c0_i32_0 = arith.constant 0 : i32
    %c0_i32_1 = arith.constant 0 : i32
    return %c0_i32, %c0_i32_0 : i32, i32
  }
  func.func @transform_8(%arg0: i32) -> (i32, i32) {
    %c0_i32 = arith.constant 0 : i32
    %c0_i32_0 = arith.constant 0 : i32
    %c0_i32_1 = arith.constant 0 : i32
    return %c0_i32, %c0_i32_0 : i32, i32
  }
  func.func @transform_9(%arg0: i32) -> (i32, i32) {
    %c0_i32 = arith.constant 0 : i32
    %c0_i32_0 = arith.constant 0 : i32
    return %arg0, %c0_i32 : i32, i32
  }
}

</mosaic_0001>

<bundles_post_ra>
// kernel: tpu_custom_call.1
= control target key start
LH: loop header
LB: loop body
LE: loop exit
PB: predicated region body
PF: predicated region fallthrough
CT: control target
= control target key end

     0   :  { %s792_s0 = inlined_call_operand.vmem [shape: f32[16,16], index: 0, kind: input, shape index: {}]   ;;  %s793_s1 = inlined_call_operand.vmem [shape: f32[16,4], index: 1, kind: input, shape index: {}]   ;;  %s794_s2 = inlined_call_operand.hbm [shape: bf16[16,256], index: 2, kind: input, shape index: {}]   ;;  %s795_s3 = inlined_call_operand.vmem [shape: bf16[4,256], index: 3, kind: input, shape index: {}]   ;;  %s796_s4 = inlined_call_operand.vmem [shape: f32[1,256], index: 4, kind: input, shape index: {}]   ;;  %s797_s5 = inlined_call_operand.hbm [shape: bf16[256,256], index: 5, kind: input, shape index: {}]   ;;  %s798_s6 = inlined_call_operand.vmem [shape: f32[1,256], index: 6, kind: input, shape index: {}]   ;;  %s799_s7 = inlined_call_operand.vmem [shape: f32[1,256], index: 7, kind: input, shape index: {}]   ;;  %s800_s8 = inlined_call_operand.<no memory space> [shape: f32[1,1], index: 8, kind: input, shape index: {}]   ;;  %s801_s9 = inlined_call_operand.vmem [shape: f32[16,1], index: 9, kind: output, shape index: {}]  }
   0x1   :  { %v14_v0 = vstv %s800_s8 }
   0x2   :  { %15 = vst [vmem:[#allocation2] sm:$0x1] %v14_v0 }
   0x3   :  { %16 = vsyncpa [#allocation4], 0  ;;  %s26_s13 = sshll.u32 %s794_s2, 4  ;;  %s27_s13 = int_to_ptr.hbm [resolvable:$true] %s26_s13 }
   0x4   :  { %17 = vsyncpa [#allocation6], 0  ;;  %s695_s14 = smov [#allocation3]   ;;  %s43_s18 = sshll.u32 %s797_s5, 4  ;;  %s44_s18 = int_to_ptr.hbm [resolvable:$true] %s43_s18 }
   0x5   :  { %s28_s15 = sshll.u32 %s695_s14, 4  ;;  %s696_s19 = smov 128   ;;  %s29_s15 = int_to_ptr.vmem [resolvable:$true] %s28_s15 }
   0x6   :  { %s697_s20 = smov 8   ;;  %s698_s8 = smov [#allocation5]  }
   0x7   :  { %34 = dma.hbm_to_vmem [thread:$0]  %s27_s13, 256, %s29_s15, [#allocation4], %s696_s19, %s696_s19, %s697_s20  }
   0x8   :  { %s45_s21 = sshll.u32 %s698_s8, 4  ;;  %s46_s21 = int_to_ptr.vmem [resolvable:$true] %s45_s21 }
   0x9   :  { %51 = dma.hbm_to_vmem [thread:$0]  %s44_s18, 4096, %s46_s21, [#allocation6], %s696_s19, %s696_s19, %s697_s20  }
   0xa   :  { %691 = dma.done.wait [#allocation4], 256  }
   0xb   :  { %692 = vsyncadd [#allocation4], 4294967040 }
   0xc   :  { %693 = dma.done.wait [#allocation6], 4096  }
   0xd   :  { %694 = vsyncadd [#allocation6], 4294963200  ;;  %v468_v1 = vld [vmem:[#allocation3] sm:$0xf]  ;;  %v605_v2 = vld [vmem:[#allocation3 + $0x4] sm:$0xf0] }
   0xe   :  { %v604_v3 = vld [vmem:[#allocation3 + $0x4] sm:$0xf]  ;;  %v469_v4 = vor.u32 %v605_v2, %v468_v1  ;;  %v470_v5 = vld [vmem:[#allocation3 + $0x8] sm:$0xf0]  ;;  %v67_v6 = vld [vmem:[%s792_s0] sm:$0xff]  ;;  %vm127_vm0 = vcmask 130048  }
   0xf   :  { %v68_v7 = vld [vmem:[%s792_s0 + $0x8] sm:$0xff]  ;;  %v473_v8 = vor.u32 %v604_v3, %v470_v5  ;;  %v75_v10 = vld [vmem:[%s795_s3] sm:$0xf]  ;;  %v536_v13 = vld [vmem:[#allocation5 + $0x78] sm:$0xf0]  ;;  %vm84_vm1 = vcmask 1041408  }
  0x10   :  { %v69_v9 = vpack.c.bf16 %v68_v7, %v67_v6  ;;  %138 = vmatpush.bf16.msra.mxu2 %v469_v4  ;;  %77 = vst [vmem:[#allocation1] ss:$4 sm:$0xff] %v75_v10  ;;  %v534_v11 = vld [vmem:[#allocation5 + $0x70] sm:$0xf]  ;;  %v620_v12 = vld [vmem:[#allocation5 + $0x74] sm:$0xf] }
  0x11   :  { %152 = vmatpush.bf16.msra.mxu3 %v473_v8  ;;  %v636_v14 = vld [vmem:[#allocation5 + $0xf4] sm:$0xf]  ;;  %v600_v15 = vld [vmem:[#allocation5 + $0xf8] sm:$0xf0]  ;;  %v70_v16 = vld [vmem:[%s793_s1] sm:$0xff]  ;;  %v539_v20 = vor.u32 %v620_v12, %v536_v13  ;;  %vm80_vm2 = vcmask 31744  }
  0x12   :  { %v621_v17 = vld [vmem:[#allocation5 + $0x74] sm:$0xf0]  ;;  %v598_v18 = vld [vmem:[#allocation5 + $0xf0] sm:$0xf]  ;;  %v603_v21 = vor.u32 %v636_v14, %v600_v15  ;;  %v618_v23 = vld [vmem:[#allocation5 + $0x64] sm:$0xf] }
  0x13   :  { %474 = vmatmul.msk.bf16.vlgmr.msra.gmra.mxu2 %vm127_vm0, %v69_v9  ;;  %v637_v19 = vld [vmem:[#allocation5 + $0xf4] sm:$0xf0]  ;;  %v71_v22 = vld [vmem:[%s793_s1 + $0x8] sm:$0xff]  ;;  %v526_v25 = vld [vmem:[#allocation5 + $0x60] sm:$0xf]  ;;  %v535_v28 = vor.u32 %v621_v17, %v534_v11  ;;  %vm455_vm3 = vcmask 7168  }
  0x14   :  { %475 = vmatmul.msk.bf16.vlgmr.msra.gmra.mxu3 %vm127_vm0, %v69_v9  ;;  %v528_v24 = vld [vmem:[#allocation5 + $0x68] sm:$0xf0]  ;;  %401 = vmatpush.bf16.msrb.mxu2 %v539_v20  ;;  %v634_v26 = vld [vmem:[#allocation5 + $0xe4] sm:$0xf]  ;;  %v599_v29 = vor.u32 %v637_v19, %v598_v18  ;;  %v619_v30 = vld [vmem:[#allocation5 + $0x64] sm:$0xf0]  ;;  %v72_v39 = vpack.c.bf16 %v71_v22, %v70_v16 }
  0x15   :  { %415 = vmatpush.bf16.msrb.mxu3 %v603_v21  ;;  %v592_v27 = vld [vmem:[#allocation5 + $0xe8] sm:$0xf0]  ;;  %v590_v31 = vld [vmem:[#allocation5 + $0xe0] sm:$0xf]  ;;  %v635_v32 = vld [vmem:[#allocation5 + $0xe4] sm:$0xf0]  ;;  %v531_v35 = vor.u32 %v618_v23, %v528_v24  ;;  %v527_v44 = vor.u32 %v619_v30, %v526_v25 }
  0x16   :  { %v595_v36 = vor.u32 %v634_v26, %v592_v27  ;;  %v616_v40 = vld [vmem:[#allocation5 + $0x54] sm:$0xf]  ;;  %v520_v41 = vld [vmem:[#allocation5 + $0x58] sm:$0xf0]  ;;  %v591_v45 = vor.u32 %v635_v32, %v590_v31  ;;  %v518_v46 = vld [vmem:[#allocation5 + $0x50] sm:$0xf] }
  0x17   :  { %v78_v33 = vld.sshfl [vmem:[#allocation1] sm:$0xff pattern:$0x73625140]  ;;  %v79_v34 = vld.sshfl [vmem:[#allocation1 + $0x8] sm:$0xff pattern:$0x73625140]  ;;  %v523_v50 = vor.u32 %v616_v40, %v520_v41 }
  0x18   :  { %v85_v37 = vsel %vm84_vm1, %v78_v33, 0  ;;  %v87_v38 = vsel %vm84_vm1, %v79_v34, 0  ;;  %v632_v42 = vld [vmem:[#allocation5 + $0xd4] sm:$0xf]  ;;  %v584_v43 = vld [vmem:[#allocation5 + $0xd8] sm:$0xf0]  ;;  %402 = vmatpush.bf16.msrb.mxu2 %v531_v35 }
  0x19   :  { %96 = vmatpush.bf16.msra.mxu0 %v85_v37  ;;  %110 = vmatpush.bf16.msra.mxu1 %v87_v38  ;;  %v617_v47 = vld [vmem:[#allocation5 + $0x54] sm:$0xf0]  ;;  %v582_v48 = vld [vmem:[#allocation5 + $0xd0] sm:$0xf]  ;;  %v587_v51 = vor.u32 %v632_v42, %v584_v43  ;;  %v614_v52 = vld [vmem:[#allocation5 + $0x44] sm:$0xf] }
  0x1a   :  { %416 = vmatpush.bf16.msrb.mxu3 %v595_v36  ;;  %v633_v49 = vld [vmem:[#allocation5 + $0xd4] sm:$0xf0]  ;;  %v512_v53 = vld [vmem:[#allocation5 + $0x48] sm:$0xf0]  ;;  %v630_v54 = vld [vmem:[#allocation5 + $0xc4] sm:$0xf]  ;;  %v519_v56 = vor.u32 %v617_v47, %v518_v46 }
  0x1b   :  { %v576_v55 = vld [vmem:[#allocation5 + $0xc8] sm:$0xf0]  ;;  %v583_v57 = vor.u32 %v633_v49, %v582_v48  ;;  %v510_v58 = vld [vmem:[#allocation5 + $0x40] sm:$0xf]  ;;  %v615_v59 = vld [vmem:[#allocation5 + $0x44] sm:$0xf0]  ;;  %v515_v62 = vor.u32 %v614_v52, %v512_v53 }
  0x1c   :  { %464 = vmatmul.msk.bf16.vlgmr.msra.gmra.mxu0 %vm80_vm2, %v72_v39  ;;  %465 = vmatmul.msk.bf16.vlgmr.msra.gmra.mxu1 %vm80_vm2, %v72_v39  ;;  %v574_v60 = vld [vmem:[#allocation5 + $0xc0] sm:$0xf]  ;;  %v631_v61 = vld [vmem:[#allocation5 + $0xc4] sm:$0xf0]  ;;  %v579_v63 = vor.u32 %v630_v54, %v576_v55  ;;  %v511_v0 = vor.u32 %v615_v59, %v510_v58  ;;  %v502_v2 = vld [vmem:[#allocation5 + $0x30] sm:$0xf] }
  0x1d   :  { %373 = vmatpush.bf16.msrb.mxu0 %v535_v28  ;;  %387 = vmatpush.bf16.msrb.mxu1 %v599_v29  ;;  %v575_v1 = vor.u32 %v631_v61, %v574_v60  ;;  %v613_v3 = vld [vmem:[#allocation5 + $0x34] sm:$0xf0]  ;;  %v566_v4 = vld [vmem:[#allocation5 + $0xb0] sm:$0xf]  ;;  %v612_v7 = vld [vmem:[#allocation5 + $0x34] sm:$0xf] }
  0x1e   :  { %403 = vmatpush.bf16.msrb.mxu2 %v523_v50  ;;  %417 = vmatpush.bf16.msrb.mxu3 %v587_v51  ;;  %v503_v5 = vor.u32 %v613_v3, %v502_v2  ;;  %v629_v6 = vld [vmem:[#allocation5 + $0xb4] sm:$0xf0]  ;;  %v504_v9 = vld [vmem:[#allocation5 + $0x38] sm:$0xf0]  ;;  %v628_v10 = vld [vmem:[#allocation5 + $0xb4] sm:$0xf] }
  0x1f   :  { %v567_v8 = vor.u32 %v629_v6, %v566_v4  ;;  %v507_v11 = vor.u32 %v612_v7, %v504_v9  ;;  %v568_v12 = vld [vmem:[#allocation5 + $0xb8] sm:$0xf0]  ;;  %v494_v14 = vld [vmem:[#allocation5 + $0x20] sm:$0xf]  ;;  %v611_v15 = vld [vmem:[#allocation5 + $0x24] sm:$0xf0] }
  0x20   :  { %v571_v13 = vor.u32 %v628_v10, %v568_v12  ;;  %v495_v16 = vor.u32 %v611_v15, %v494_v14  ;;  %v558_v17 = vld [vmem:[#allocation5 + $0xa0] sm:$0xf]  ;;  %v627_v18 = vld [vmem:[#allocation5 + $0xa4] sm:$0xf0]  ;;  %v610_v19 = vld [vmem:[#allocation5 + $0x24] sm:$0xf] }
  0x21   :  { %374 = vmatpush.bf16.msrb.mxu0 %v527_v44  ;;  %388 = vmatpush.bf16.msrb.mxu1 %v591_v45  ;;  %v559_v20 = vor.u32 %v627_v18, %v558_v17  ;;  %v496_v21 = vld [vmem:[#allocation5 + $0x28] sm:$0xf0]  ;;  %v626_v22 = vld [vmem:[#allocation5 + $0xa4] sm:$0xf]  ;;  %v486_v26 = vld [vmem:[#allocation5 + $0x10] sm:$0xf] }
  0x22   :  { %404 = vmatpush.bf16.msrb.mxu2 %v515_v62  ;;  %418 = vmatpush.bf16.msrb.mxu3 %v579_v63  ;;  %v560_v23 = vld [vmem:[#allocation5 + $0xa8] sm:$0xf0]  ;;  %v499_v24 = vor.u32 %v610_v19, %v496_v21  ;;  %v609_v27 = vld [vmem:[#allocation5 + $0x14] sm:$0xf0]  ;;  %v550_v28 = vld [vmem:[#allocation5 + $0x90] sm:$0xf] }
  0x23   :  { %v563_v25 = vor.u32 %v626_v22, %v560_v23  ;;  %v487_v29 = vor.u32 %v609_v27, %v486_v26  ;;  %v625_v30 = vld [vmem:[#allocation5 + $0x94] sm:$0xf0]  ;;  %v608_v31 = vld [vmem:[#allocation5 + $0x14] sm:$0xf]  ;;  %v488_v32 = vld [vmem:[#allocation5 + $0x18] sm:$0xf0] }
  0x24   :  { %v551_v33 = vor.u32 %v625_v30, %v550_v28  ;;  %v491_v34 = vor.u32 %v608_v31, %v488_v32  ;;  %v624_v35 = vld [vmem:[#allocation5 + $0x94] sm:$0xf]  ;;  %v552_v36 = vld [vmem:[#allocation5 + $0x98] sm:$0xf0]  ;;  %v478_v38 = vld [vmem:[#allocation5] sm:$0xf] }
  0x25   :  { %375 = vmatpush.bf16.msrb.mxu0 %v519_v56  ;;  %389 = vmatpush.bf16.msrb.mxu1 %v583_v57  ;;  %v555_v37 = vor.u32 %v624_v35, %v552_v36  ;;  %v607_v39 = vld [vmem:[#allocation5 + $0x4] sm:$0xf0]  ;;  %v542_v40 = vld [vmem:[#allocation5 + $0x80] sm:$0xf]  ;;  %v606_v43 = vld [vmem:[#allocation5 + $0x4] sm:$0xf] }
  0x26   :  { %405 = vmatpush.bf16.msrb.mxu2 %v507_v11  ;;  %419 = vmatpush.bf16.msrb.mxu3 %v571_v13  ;;  %v479_v41 = vor.u32 %v607_v39, %v478_v38  ;;  %v623_v42 = vld [vmem:[#allocation5 + $0x84] sm:$0xf0]  ;;  %v480_v44 = vld [vmem:[#allocation5 + $0x8] sm:$0xf0]  ;;  %v622_v47 = vld [vmem:[#allocation5 + $0x84] sm:$0xf] }
  0x27   :  { %v543_v45 = vor.u32 %v623_v42, %v542_v40  ;;  %v483_v46 = vor.u32 %v606_v43, %v480_v44  ;;  %v544_v48 = vld [vmem:[#allocation5 + $0x88] sm:$0xf0]  ;;  %v159_v54 = vld [vmem:[%s796_s4] sm:$0x3] }
  0x28   :  { %v547_v49 = vor.u32 %v622_v47, %v544_v48  ;;  %v161_v56 = vperm.slane %v159_v54, 0  ;;  %v162_v58 = vperm.slane %v159_v54, 1  ;;  %v207_v11 = vld [vmem:[%s798_s6] sm:$0x3]  ;;  %v642_v43 = vld [vmem:[#allocation2] ss:$0 sm:$0xff] }
  0x29   :  { %376 = vmatpush.bf16.msrb.mxu0 %v511_v0  ;;  %390 = vmatpush.bf16.msrb.mxu1 %v575_v1  ;;  %v209_v12 = vperm.slane %v207_v11, 0  ;;  %v433_v18 = vld [vmem:[%s799_s7] sm:$0x3] }
  0x2a   :  { %406 = vmatpush.bf16.msrb.mxu2 %v499_v24  ;;  %420 = vmatpush.bf16.msrb.mxu3 %v563_v25  ;;  %v435_v23 = vperm.slane %v433_v18, 0  ;;  %v436_v27 = vperm.slane %v433_v18, 1 }
  0x2d   :  { %377 = vmatpush.bf16.msrb.mxu0 %v503_v5  ;;  %391 = vmatpush.bf16.msrb.mxu1 %v567_v8 }
  0x2e   :  { %407 = vmatpush.bf16.msrb.mxu2 %v491_v34  ;;  %421 = vmatpush.bf16.msrb.mxu3 %v555_v37 }
  0x31   :  { %378 = vmatpush.bf16.msrb.mxu0 %v495_v16  ;;  %392 = vmatpush.bf16.msrb.mxu1 %v559_v20  ;;  %v210_v16 = vperm.slane %v207_v11, 1 }
  0x32   :  { %408 = vmatpush.bf16.msrb.mxu2 %v483_v46  ;;  %422 = vmatpush.bf16.msrb.mxu3 %v547_v49 }
  0x35   :  { %379 = vmatpush.bf16.msrb.mxu0 %v487_v29  ;;  %393 = vmatpush.bf16.msrb.mxu1 %v551_v33 }
  0x39   :  { %380 = vmatpush.bf16.msrb.mxu0 %v479_v41  ;;  %394 = vmatpush.bf16.msrb.mxu1 %v543_v45 }
  0x96   :  { %v140_v50 = vpop.f32.mrf.mxu2 }
  0x97   :  { %v154_v51 = vpop.f32.mrf.mxu3 }
  0x99   :  { %v98_v52 = vpop.f32.mrf.mxu0  ;;  %v112_v53 = vpop.f32.mrf.mxu1 }
  0x9a   :  { %v141_v55 = vadd.f32 %v140_v50, %v98_v52  ;;  %v155_v57 = vadd.f32 %v154_v51, %v112_v53 }
  0x9c   :  { %v165_v63 = vadd.f32 %v161_v56, %v141_v55  ;;  %v166_v0 = vadd.f32 %v162_v58, %v155_v57 }
  0x9e   :  { %v142_v59 = vpop.f32.mrf.mxu2  ;;  %v169_v5 = vmax.f32 %v165_v63, 0.0  ;;  %v170_v6 = vmax.f32 %v166_v0, 0.0 }
  0x9f   :  { %v156_v60 = vpop.f32.mrf.mxu3 }
  0xa1   :  { %v100_v61 = vpop.f32.mrf.mxu0  ;;  %v114_v62 = vpop.f32.mrf.mxu1 }
  0xa2   :  { %v143_v1 = vadd.f32 %v142_v59, %v100_v61  ;;  %v157_v2 = vadd.f32 %v156_v60, %v114_v62 }
  0xa4   :  { %v167_v3 = vadd.f32 %v161_v56, %v143_v1  ;;  %v168_v4 = vadd.f32 %v162_v58, %v157_v2 }
  0xa6   :  { %v171_v7 = vmax.f32 %v167_v3, 0.0  ;;  %v172_v8 = vmax.f32 %v168_v4, 0.0 }
  0xa8   :  { %v173_v9 = vpack.c.bf16 %v171_v7, %v169_v5  ;;  %v174_v10 = vpack.c.bf16 %v172_v8, %v170_v6 }
  0xaa   :  { %381 = vmatmul.bf16.vlgmr.msrb.gmra.mxu0 %v173_v9  ;;  %395 = vmatmul.bf16.vlgmr.msrb.gmra.mxu1 %v174_v10 }
  0xab   :  { %409 = vmatmul.bf16.vlgmr.msrb.gmra.mxu2 %v173_v9  ;;  %423 = vmatmul.bf16.vlgmr.msrb.gmra.mxu3 %v174_v10 }
 0x127   :  { %v382_v13 = vpop.f32.mrf.mxu0  ;;  %v396_v15 = vpop.f32.mrf.mxu1 }
 0x128   :  { %v383_v14 = vadd.f32 %v382_v13, %v209_v12 }
 0x12a   :  { %v397_v17 = vadd.f32 %v396_v15, %v383_v14 }
 0x12c   :  { %v429_v24 = vmax.f32 %v397_v17, 0.0 }
 0x12e   :  { %v410_v19 = vpop.f32.mrf.mxu2  ;;  %v424_v20 = vpop.f32.mrf.mxu3  ;;  %v439_v31 = vmul.f32 %v435_v23, %v429_v24 }
 0x12f   :  { %v411_v21 = vadd.f32 %v410_v19, %v210_v16  ;;  %v384_v22 = vpop.f32.mrf.mxu0  ;;  %v398_v29 = vpop.f32.mrf.mxu1 }
 0x130   :  { %v385_v26 = vadd.f32 %v384_v22, %v209_v12 }
 0x131   :  { %v425_v25 = vadd.f32 %v424_v20, %v411_v21 }
 0x132   :  { %v399_v30 = vadd.f32 %v398_v29, %v385_v26 }
 0x133   :  { %v430_v28 = vmax.f32 %v425_v25, 0.0 }
 0x134   :  { %v431_v37 = vmax.f32 %v399_v30, 0.0 }
 0x135   :  { %v440_v32 = vmul.f32 %v436_v27, %v430_v28 }
 0x136   :  { %v412_v33 = vpop.f32.mrf.mxu2  ;;  %v426_v36 = vpop.f32.mrf.mxu3  ;;  %v441_v40 = vmul.f32 %v435_v23, %v431_v37 }
 0x137   :  { %v413_v34 = vadd.f32 %v412_v33, %v210_v16  ;;  %v443_v35 = vadd.f32 %v440_v32, %v439_v31 }
 0x139   :  { %v427_v38 = vadd.f32 %v426_v36, %v413_v34  ;;  %444 = vadd.xlane.f32.xlu0 %v443_v35 }
 0x13b   :  { %v432_v39 = vmax.f32 %v427_v38, 0.0 }
 0x13d   :  { %v442_v41 = vmul.f32 %v436_v27, %v432_v39 }
 0x13f   :  { %v446_v42 = vadd.f32 %v442_v41, %v441_v40 }
 0x141   :  { %447 = vadd.xlane.f32.xlu0 %v446_v42 }
 0x1ac   :  { %v445_v44 = vpop.xlane.xlu0 %444 }
 0x1ad   :  { %v453_v45 = vadd.f32 %v642_v43, %v445_v44 }
 0x1af   :  { %456 = vst.msk [vmem:[%s801_s9] sm:$0xff] %vm455_vm3, %v453_v45 }
 0x1b4   :  { %v448_v46 = vpop.xlane.xlu0 %447 }
 0x1b5   :  { %v454_v47 = vadd.f32 %v642_v43, %v448_v46 }
 0x1b7   :  { %457 = vst.msk [vmem:[%s801_s9 + $0x8] sm:$0xff] %vm455_vm3, %v454_v47 }
 0x1b8   :  { %462 = vsyncpa [#allocation4], 1 }
 0x1b9   :  { %463 = vsyncpa [#allocation6], 1 }

</bundles_post_ra>
